<compile_context>
chip_gen: v5e
topology: v5e:2x2
jax: 0.10.0
libtpu: 0.0.40
codegen_flags: <defaults>
</compile_context>

<pallas_src>
import math

import jax
import jax.numpy as jnp
from jax import lax
from jax.experimental import pallas as pl
from jax.experimental.pallas import tpu as pltpu


# ---------------------------------------------------------------------------
# Stage 1: fused full-width QKV projection -> per-head layout [B, H, S, d_k]
# ---------------------------------------------------------------------------
def make_qkv_proj_kernel(n_heads: int, d_k: int, compute_dtype):
    def qkv_proj_kernel(xq_ref, xk_ref, xv_ref,
                        wq_ref, bq_ref, wk_ref, bk_ref, wv_ref, bv_ref,
                        qh_ref, kh_ref, vh_ref):
        def project(x_ref, w_ref, b_ref, o_ref):
            x = x_ref[0].astype(compute_dtype)                      # (ts, D)
            y = jnp.dot(x, w_ref[...],
                        preferred_element_type=jnp.float32) + b_ref[...]
            y = y.astype(compute_dtype)                             # (ts, D)
            # Split the lane dim into heads with static slices (no transpose).
            for h in range(n_heads):
                o_ref[0, h] = y[:, h * d_k:(h + 1) * d_k]           # (ts, d_k)

        project(xq_ref, wq_ref, bq_ref, qh_ref)   # scale folded into wq/bq
        project(xk_ref, wk_ref, bk_ref, kh_ref)
        project(xv_ref, wv_ref, bv_ref, vh_ref)

    return qkv_proj_kernel


# ---------------------------------------------------------------------------
# Stage 2: attention + fused output projection
# ---------------------------------------------------------------------------
def make_attention_kernel(d_k: int, compute_dtype, need_weights: bool):
    def attention_kernel(qh_ref, kh_ref, vh_ref, wo_ref, bo_ref,
                         out_ref, *rest):
        if need_weights:
            attn_ref, acc_ref = rest
        else:
            (acc_ref,) = rest

        h = pl.program_id(2)

        @pl.when(h == 0)
        def _init():
            acc_ref[...] = jnp.zeros_like(acc_ref)

        qh = qh_ref[0, 0]            # (tq, d_k) bf16, 1/sqrt(d_k) pre-folded
        kh = kh_ref[0, 0]            # (S,  d_k) bf16
        vh = vh_ref[0, 0]            # (S,  d_k) bf16

        # scores = qh @ kh^T as a last-axis contraction (no explicit transpose).
        scores = lax.dot_general(
            qh, kh,
            dimension_numbers=(((1,), (1,)), ((), ())),
            preferred_element_type=jnp.float32)                     # (tq, S) f32

        # Numerically stable softmax over keys (exact reciprocal -> rows sum to 1).
        m = jnp.max(scores, axis=-1, keepdims=True)
        p = jnp.exp(scores - m)
        denom = jnp.sum(p, axis=-1, keepdims=True)
        attn = p * pl.reciprocal(denom)                             # (tq, S) f32

        if need_weights:
            attn_ref[0, 0] = attn.astype(attn_ref.dtype)

        # dropout(p=0.1): eval-mode identity.
        # TODO(synk): training-mode dropout via pltpu PRNG if needed.

        attn_c = attn.astype(compute_dtype)
        ctx = jnp.dot(attn_c, vh,
                      preferred_element_type=jnp.float32)           # (tq, d_k) f32

        # Output projection accumulated per head; Wo is resident in VMEM as a
        # single (H, d_k, D) block, dynamically indexed (no per-step weight DMA).
        wo_h = wo_ref[h]                                            # (d_k, D) bf16
        acc_ref[...] += jnp.dot(ctx.astype(compute_dtype), wo_h,
                                preferred_element_type=jnp.float32)  # (tq, D)

        @pl.when(h == pl.num_programs(2) - 1)
        def _finalize():
            out_ref[0] = (acc_ref[...] + bo_ref[...]).astype(out_ref.dtype)

    return attention_kernel


def multi_head_attention(q, k, v, params, n_heads: int, *,
                         need_weights: bool = True,
                         attn_dtype=None,
                         compute_dtype=jnp.bfloat16,
                         q_tile: int = 256,
                         s_tile: int = 256,
                         vmem_limit_bytes: int = 64 * 1024 * 1024):
    """q, k, v: [B, S, D]; params: dict with wq/wk/wv/wo [D_in, D_out]
    (pre-transposed) and bq/bk/bv/bo [D].  Returns (out, attn) — attn is None
    when need_weights=False."""
    B, S, D = q.shape
    assert k.shape == (B, S, D) and v.shape == (B, S, D)
    assert D % n_heads == 0
    d_k = D // n_heads
    ts = min(S, s_tile)
    tq = min(S, q_tile)
    assert S % ts == 0 and S % tq == 0   # TODO(synk): pad ragged sequence lengths
    nq = S // tq
    if attn_dtype is None:
        attn_dtype = q.dtype
    scale = 1.0 / math.sqrt(d_k)

    # Host-side weight plumbing: bf16 weights/biases, softmax scale folded into
    # the Q projection, Wo pre-split per head for dynamic in-kernel indexing.
    wq = (params["wq"] * scale).astype(compute_dtype)
    bq = (params["bq"] * scale).astype(compute_dtype).reshape(1, D)
    wk = params["wk"].astype(compute_dtype)
    bk = params["bk"].astype(compute_dtype).reshape(1, D)
    wv = params["wv"].astype(compute_dtype)
    bv = params["bv"].astype(compute_dtype).reshape(1, D)
    wo_heads = params["wo"].reshape(n_heads, d_k, D).astype(compute_dtype)
    bo = params["bo"].astype(compute_dtype).reshape(1, D)

    csize = jnp.dtype(compute_dtype).itemsize
    isize = jnp.dtype(q.dtype).itemsize
    osize = jnp.dtype(q.dtype).itemsize
    asize = jnp.dtype(attn_dtype).itemsize

    # ---------------- Stage 1: QKV projection ----------------
    x_spec = pl.BlockSpec((1, ts, D), lambda b, si: (b, si, 0))
    w_spec = pl.BlockSpec((D, D), lambda b, si: (0, 0))        # resident
    b_spec = pl.BlockSpec((1, D), lambda b, si: (0, 0))        # resident
    h_spec = pl.BlockSpec((1, n_heads, ts, d_k), lambda b, si: (b, 0, si, 0))

    proj_cost = pl.CostEstimate(
        flops=3 * 2 * B * S * D * D,
        transcendentals=0,
        bytes_accessed=(3 * B * S * D * (isize + csize)
                        + 3 * (D * D + D) * csize))

    qh, kh, vh = pl.pallas_call(
        make_qkv_proj_kernel(n_heads, d_k, compute_dtype),
        out_shape=tuple(jax.ShapeDtypeStruct((B, n_heads, S, d_k), compute_dtype)
                        for _ in range(3)),
        grid_spec=pltpu.PrefetchScalarGridSpec(
            num_scalar_prefetch=0,
            grid=(B, S // ts),
            in_specs=[x_spec, x_spec, x_spec,
                      w_spec, b_spec, w_spec, b_spec, w_spec, b_spec],
            out_specs=(h_spec, h_spec, h_spec)),
        compiler_params=pltpu.CompilerParams(
            dimension_semantics=("parallel", "parallel"),
            vmem_limit_bytes=vmem_limit_bytes),
        cost_estimate=proj_cost,
    )(q, k, v, wq, bq, wk, bk, wv, bv)

    # ---------------- Stage 2: attention + output projection ----------------
    qh_spec = pl.BlockSpec((1, 1, tq, d_k), lambda b, qi, h: (b, h, qi, 0))
    kv_spec = pl.BlockSpec((1, 1, S, d_k), lambda b, qi, h: (b, h, 0, 0))
    wo_spec = pl.BlockSpec((n_heads, d_k, D), lambda b, qi, h: (0, 0, 0))  # resident
    bo_spec = pl.BlockSpec((1, D), lambda b, qi, h: (0, 0))
    out_spec = pl.BlockSpec((1, tq, D), lambda b, qi, h: (b, qi, 0))

    out_shapes = [jax.ShapeDtypeStruct((B, S, D), q.dtype)]
    out_specs = [out_spec]
    if need_weights:
        out_shapes.append(jax.ShapeDtypeStruct((B, n_heads, S, S), attn_dtype))
        out_specs.append(
            pl.BlockSpec((1, 1, tq, S), lambda b, qi, h: (b, h, qi, 0)))

    attn_cost = pl.CostEstimate(
        flops=4 * B * n_heads * S * S * d_k + 2 * B * S * D * D,
        transcendentals=B * n_heads * S * S,
        bytes_accessed=(B * n_heads * S * d_k * csize              # qh
                        + 2 * nq * B * n_heads * S * d_k * csize   # kh, vh streamed per q tile
                        + (n_heads * d_k * D + D) * csize          # wo, bo (resident)
                        + B * S * D * osize                        # out
                        + (B * n_heads * S * S * asize if need_weights else 0)))

    results = pl.pallas_call(
        make_attention_kernel(d_k, compute_dtype, need_weights),
        out_shape=tuple(out_shapes),
        grid_spec=pltpu.PrefetchScalarGridSpec(
            num_scalar_prefetch=0,
            grid=(B, nq, n_heads),
            in_specs=[qh_spec, kv_spec, kv_spec, wo_spec, bo_spec],
            out_specs=tuple(out_specs),
            scratch_shapes=[pltpu.VMEM((tq, D), jnp.float32)]),
        compiler_params=pltpu.CompilerParams(
            dimension_semantics=("parallel", "parallel", "arbitrary"),
            vmem_limit_bytes=vmem_limit_bytes),
        cost_estimate=attn_cost,
    )(qh, kh, vh, wo_heads, bo)

    if need_weights:
        out, attn = results
        return out, attn
    out = results[0] if isinstance(results, (tuple, list)) else results
    return out, None


# ---------------------------------------------------------------------------
# Parameter init + pure-JAX reference (PyTorch-equivalent, eval mode, no mask)
# ---------------------------------------------------------------------------
def init_params(key, d_model):
    """Deterministic init, PyTorch nn.Linear-like.  Weights are stored
    transposed -> [D_in, D_out]; biases are [D]."""
    ks = jax.random.split(key, 8)
    bound = 1.0 / math.sqrt(d_model)

    def lin(kw, kb):
        w = jax.random.uniform(kw, (d_model, d_model), jnp.float32, -bound, bound)
        b = jax.random.uniform(kb, (d_model,), jnp.float32, -bound, bound)
        return w, b

    wq, bq = lin(ks[0], ks[1])
    wk, bk = lin(ks[2], ks[3])
    wv, bv = lin(ks[4], ks[5])
    wo, bo = lin(ks[6], ks[7])
    return dict(wq=wq, bq=bq, wk=wk, bk=bk, wv=wv, bv=bv, wo=wo, bo=bo)


def reference_mha(q, k, v, params, n_heads):
    """Pure-JAX f32 reference mirroring the PyTorch forward (eval, mask=None)."""
    B, S, D = q.shape
    d_k = D // n_heads

    def proj(x, w, b):
        return (x @ w + b).reshape(B, S, n_heads, d_k).transpose(0, 2, 1, 3)

    qh = proj(q, params["wq"], params["bq"])
    kh = proj(k, params["wk"], params["bk"])
    vh = proj(v, params["wv"], params["bv"])
    scores = jnp.einsum("bhqd,bhkd->bhqk", qh, kh) / math.sqrt(d_k)
    attn = jax.nn.softmax(scores, axis=-1)
    ctx = jnp.einsum("bhqk,bhkd->bhqd", attn, vh)
    ctx = ctx.transpose(0, 2, 1, 3).reshape(B, S, D)
    out = ctx @ params["wo"] + params["bo"]
    return out, attn


if __name__ == "__main__":
    B, S, d_model, n_heads = 2, 8, 32, 4

    key = jax.random.PRNGKey(0)
    kq, kk, kv_, kp = jax.random.split(key, 4)
    q = jax.random.normal(kq, (B, S, d_model), jnp.float32)
    k = jax.random.normal(kk, (B, S, d_model), jnp.float32)
    v = jax.random.normal(kv_, (B, S, d_model), jnp.float32)
    params = init_params(kp, d_model)

    out, attn = multi_head_attention(q, k, v, params, n_heads)
    out = jax.block_until_ready(out)
    attn = jax.block_until_ready(attn)

    ref_out, ref_attn = reference_mha(q, k, v, params, n_heads)
    assert out.shape == (B, S, d_model)
    assert attn.shape == (B, n_heads, S, S)
    # bf16 matmul operands (f32 accumulation) vs. f32 reference -> loose tolerance.
    assert jnp.allclose(out, ref_out, atol=3e-2, rtol=3e-2), \
        float(jnp.max(jnp.abs(out - ref_out)))
    assert jnp.allclose(attn, ref_attn, atol=3e-2, rtol=3e-2), \
        float(jnp.max(jnp.abs(attn - ref_attn)))

    # Fast path: no (B, H, S, S) attention-weights writeback.
    out_fast, attn_none = multi_head_attention(q, k, v, params, n_heads,
                                               need_weights=False)
    out_fast = jax.block_until_ready(out_fast)
    assert attn_none is None
    assert jnp.allclose(out_fast, ref_out, atol=3e-2, rtol=3e-2)

    print("KERNEL_OK")
</pallas_src>

<mosaic_0001>
module attributes {stable_mosaic.version = 11 : i64} {
  func.func @qkv_proj_kernel(%arg0: i32, %arg1: i32, %arg2: memref<1x8x32xf32, #tpu.memory_space<vmem>>, %arg3: memref<1x8x32xf32, #tpu.memory_space<vmem>>, %arg4: memref<1x8x32xf32, #tpu.memory_space<vmem>>, %arg5: memref<32x32xbf16, #tpu.memory_space<vmem>>, %arg6: memref<1x32xbf16, #tpu.memory_space<vmem>>, %arg7: memref<32x32xbf16, #tpu.memory_space<vmem>>, %arg8: memref<1x32xbf16, #tpu.memory_space<vmem>>, %arg9: memref<32x32xbf16, #tpu.memory_space<vmem>>, %arg10: memref<1x32xbf16, #tpu.memory_space<vmem>>, %arg11: memref<1x4x8x8xbf16, #tpu.memory_space<vmem>>, %arg12: memref<1x4x8x8xbf16, #tpu.memory_space<vmem>>, %arg13: memref<1x4x8x8xbf16, #tpu.memory_space<vmem>>) attributes {dimension_semantics = [#tpu.dimension_semantics<parallel>, #tpu.dimension_semantics<parallel>], iteration_bounds = array<i64: 2, 1>, scalar_prefetch = 0 : i64, scratch_operands = 0 : i64, tpu.core_type = #tpu.core_type<tc>, window_params = [{transform_indices = @transform_0, window_bounds = array<i64: 1, 8, 32>}, {transform_indices = @transform_1, window_bounds = array<i64: 1, 8, 32>}, {transform_indices = @transform_2, window_bounds = array<i64: 1, 8, 32>}, {pipeline_mode = #tpu.pipeline_mode<synchronous>, transform_indices = @transform_3, window_bounds = array<i64: 32, 32>}, {pipeline_mode = #tpu.pipeline_mode<synchronous>, transform_indices = @transform_4, window_bounds = array<i64: 1, 32>}, {pipeline_mode = #tpu.pipeline_mode<synchronous>, transform_indices = @transform_5, window_bounds = array<i64: 32, 32>}, {pipeline_mode = #tpu.pipeline_mode<synchronous>, transform_indices = @transform_6, window_bounds = array<i64: 1, 32>}, {pipeline_mode = #tpu.pipeline_mode<synchronous>, transform_indices = @transform_7, window_bounds = array<i64: 32, 32>}, {pipeline_mode = #tpu.pipeline_mode<synchronous>, transform_indices = @transform_8, window_bounds = array<i64: 1, 32>}, {transform_indices = @transform_9, window_bounds = array<i64: 1, 4, 8, 8>}, {transform_indices = @transform_10, window_bounds = array<i64: 1, 4, 8, 8>}, {transform_indices = @transform_11, window_bounds = array<i64: 1, 4, 8, 8>}]} {
    %c0 = arith.constant 0 : index
    %c0_0 = arith.constant 0 : index
    %c0_1 = arith.constant 0 : index
    %0 = vector.load %arg2[%c0, %c0_0, %c0_1] : memref<1x8x32xf32, #tpu.memory_space<vmem>>, vector<1x8x32xf32>
    %1 = vector.shape_cast %0 : vector<1x8x32xf32> to vector<8x32xf32>
    %2 = arith.truncf %1 : vector<8x32xf32> to vector<8x32xbf16>
    %c0_2 = arith.constant 0 : index
    %c0_3 = arith.constant 0 : index
    %3 = vector.load %arg5[%c0_2, %c0_3] : memref<32x32xbf16, #tpu.memory_space<vmem>>, vector<32x32xbf16>
    %cst = arith.constant dense<0.000000e+00> : vector<8x32xf32>
    %4 = tpu.matmul %2, %3, %cst {dimension_numbers = #tpu.dot_dimension_numbers<[1], [0], [0], [1], [0, 0, 1, 1], [], []>} : vector<8x32xbf16>, vector<32x32xbf16>, vector<8x32xf32> -> vector<8x32xf32>
    %c0_4 = arith.constant 0 : index
    %c0_5 = arith.constant 0 : index
    %5 = vector.load %arg6[%c0_4, %c0_5] : memref<1x32xbf16, #tpu.memory_space<vmem>>, vector<1x32xbf16>
    %6 = arith.extf %5 : vector<1x32xbf16> to vector<1x32xf32>
    %7 = vector.broadcast %6 : vector<1x32xf32> to vector<8x32xf32>
    %8 = arith.addf %4, %7 : vector<8x32xf32>
    %9 = arith.truncf %8 : vector<8x32xf32> to vector<8x32xbf16>
    %10 = vector.extract_strided_slice %9 {offsets = [0, 0], sizes = [8, 8], strides = [1, 1]} : vector<8x32xbf16> to vector<8x8xbf16>
    %c0_6 = arith.constant 0 : index
    %c0_7 = arith.constant 0 : index
    %c0_8 = arith.constant 0 : index
    %c0_9 = arith.constant 0 : index
    %11 = vector.load %arg11[%c0_6, %c0_7, %c0_8, %c0_9] : memref<1x4x8x8xbf16, #tpu.memory_space<vmem>>, vector<1x1x8x8xbf16>
    %12 = vector.shape_cast %11 : vector<1x1x8x8xbf16> to vector<8x8xbf16>
    %13 = vector.shape_cast %10 : vector<8x8xbf16> to vector<1x1x8x8xbf16>
    tpu.vector_store %arg11[%c0_6, %c0_7, %c0_8, %c0_9], %13 {strides = array<i32>} : memref<1x4x8x8xbf16, #tpu.memory_space<vmem>>, vector<1x1x8x8xbf16>,
    %14 = vector.extract_strided_slice %9 {offsets = [0, 8], sizes = [8, 8], strides = [1, 1]} : vector<8x32xbf16> to vector<8x8xbf16>
    %c0_10 = arith.constant 0 : index
    %c1 = arith.constant 1 : index
    %c0_11 = arith.constant 0 : index
    %c0_12 = arith.constant 0 : index
    %15 = vector.load %arg11[%c0_10, %c1, %c0_11, %c0_12] : memref<1x4x8x8xbf16, #tpu.memory_space<vmem>>, vector<1x1x8x8xbf16>
    %16 = vector.shape_cast %15 : vector<1x1x8x8xbf16> to vector<8x8xbf16>
    %17 = vector.shape_cast %14 : vector<8x8xbf16> to vector<1x1x8x8xbf16>
    tpu.vector_store %arg11[%c0_10, %c1, %c0_11, %c0_12], %17 {strides = array<i32>} : memref<1x4x8x8xbf16, #tpu.memory_space<vmem>>, vector<1x1x8x8xbf16>,
    %18 = vector.extract_strided_slice %9 {offsets = [0, 16], sizes = [8, 8], strides = [1, 1]} : vector<8x32xbf16> to vector<8x8xbf16>
    %c0_13 = arith.constant 0 : index
    %c2 = arith.constant 2 : index
    %c0_14 = arith.constant 0 : index
    %c0_15 = arith.constant 0 : index
    %19 = vector.load %arg11[%c0_13, %c2, %c0_14, %c0_15] : memref<1x4x8x8xbf16, #tpu.memory_space<vmem>>, vector<1x1x8x8xbf16>
    %20 = vector.shape_cast %19 : vector<1x1x8x8xbf16> to vector<8x8xbf16>
    %21 = vector.shape_cast %18 : vector<8x8xbf16> to vector<1x1x8x8xbf16>
    tpu.vector_store %arg11[%c0_13, %c2, %c0_14, %c0_15], %21 {strides = array<i32>} : memref<1x4x8x8xbf16, #tpu.memory_space<vmem>>, vector<1x1x8x8xbf16>,
    %22 = vector.extract_strided_slice %9 {offsets = [0, 24], sizes = [8, 8], strides = [1, 1]} : vector<8x32xbf16> to vector<8x8xbf16>
    %c0_16 = arith.constant 0 : index
    %c3 = arith.constant 3 : index
    %c0_17 = arith.constant 0 : index
    %c0_18 = arith.constant 0 : index
    %23 = vector.load %arg11[%c0_16, %c3, %c0_17, %c0_18] : memref<1x4x8x8xbf16, #tpu.memory_space<vmem>>, vector<1x1x8x8xbf16>
    %24 = vector.shape_cast %23 : vector<1x1x8x8xbf16> to vector<8x8xbf16>
    %25 = vector.shape_cast %22 : vector<8x8xbf16> to vector<1x1x8x8xbf16>
    tpu.vector_store %arg11[%c0_16, %c3, %c0_17, %c0_18], %25 {strides = array<i32>} : memref<1x4x8x8xbf16, #tpu.memory_space<vmem>>, vector<1x1x8x8xbf16>,
    %c0_19 = arith.constant 0 : index
    %c0_20 = arith.constant 0 : index
    %c0_21 = arith.constant 0 : index
    %26 = vector.load %arg3[%c0_19, %c0_20, %c0_21] : memref<1x8x32xf32, #tpu.memory_space<vmem>>, vector<1x8x32xf32>
    %27 = vector.shape_cast %26 : vector<1x8x32xf32> to vector<8x32xf32>
    %28 = arith.truncf %27 : vector<8x32xf32> to vector<8x32xbf16>
    %c0_22 = arith.constant 0 : index
    %c0_23 = arith.constant 0 : index
    %29 = vector.load %arg7[%c0_22, %c0_23] : memref<32x32xbf16, #tpu.memory_space<vmem>>, vector<32x32xbf16>
    %cst_24 = arith.constant dense<0.000000e+00> : vector<8x32xf32>
    %30 = tpu.matmul %28, %29, %cst_24 {dimension_numbers = #tpu.dot_dimension_numbers<[1], [0], [0], [1], [0, 0, 1, 1], [], []>} : vector<8x32xbf16>, vector<32x32xbf16>, vector<8x32xf32> -> vector<8x32xf32>
    %c0_25 = arith.constant 0 : index
    %c0_26 = arith.constant 0 : index
    %31 = vector.load %arg8[%c0_25, %c0_26] : memref<1x32xbf16, #tpu.memory_space<vmem>>, vector<1x32xbf16>
    %32 = arith.extf %31 : vector<1x32xbf16> to vector<1x32xf32>
    %33 = vector.broadcast %32 : vector<1x32xf32> to vector<8x32xf32>
    %34 = arith.addf %30, %33 : vector<8x32xf32>
    %35 = arith.truncf %34 : vector<8x32xf32> to vector<8x32xbf16>
    %36 = vector.extract_strided_slice %35 {offsets = [0, 0], sizes = [8, 8], strides = [1, 1]} : vector<8x32xbf16> to vector<8x8xbf16>
    %c0_27 = arith.constant 0 : index
    %c0_28 = arith.constant 0 : index
    %c0_29 = arith.constant 0 : index
    %c0_30 = arith.constant 0 : index
    %37 = vector.load %arg12[%c0_27, %c0_28, %c0_29, %c0_30] : memref<1x4x8x8xbf16, #tpu.memory_space<vmem>>, vector<1x1x8x8xbf16>
    %38 = vector.shape_cast %37 : vector<1x1x8x8xbf16> to vector<8x8xbf16>
    %39 = vector.shape_cast %36 : vector<8x8xbf16> to vector<1x1x8x8xbf16>
    tpu.vector_store %arg12[%c0_27, %c0_28, %c0_29, %c0_30], %39 {strides = array<i32>} : memref<1x4x8x8xbf16, #tpu.memory_space<vmem>>, vector<1x1x8x8xbf16>,
    %40 = vector.extract_strided_slice %35 {offsets = [0, 8], sizes = [8, 8], strides = [1, 1]} : vector<8x32xbf16> to vector<8x8xbf16>
    %c0_31 = arith.constant 0 : index
    %c1_32 = arith.constant 1 : index
    %c0_33 = arith.constant 0 : index
    %c0_34 = arith.constant 0 : index
    %41 = vector.load %arg12[%c0_31, %c1_32, %c0_33, %c0_34] : memref<1x4x8x8xbf16, #tpu.memory_space<vmem>>, vector<1x1x8x8xbf16>
    %42 = vector.shape_cast %41 : vector<1x1x8x8xbf16> to vector<8x8xbf16>
    %43 = vector.shape_cast %40 : vector<8x8xbf16> to vector<1x1x8x8xbf16>
    tpu.vector_store %arg12[%c0_31, %c1_32, %c0_33, %c0_34], %43 {strides = array<i32>} : memref<1x4x8x8xbf16, #tpu.memory_space<vmem>>, vector<1x1x8x8xbf16>,
    %44 = vector.extract_strided_slice %35 {offsets = [0, 16], sizes = [8, 8], strides = [1, 1]} : vector<8x32xbf16> to vector<8x8xbf16>
    %c0_35 = arith.constant 0 : index
    %c2_36 = arith.constant 2 : index
    %c0_37 = arith.constant 0 : index
    %c0_38 = arith.constant 0 : index
    %45 = vector.load %arg12[%c0_35, %c2_36, %c0_37, %c0_38] : memref<1x4x8x8xbf16, #tpu.memory_space<vmem>>, vector<1x1x8x8xbf16>
    %46 = vector.shape_cast %45 : vector<1x1x8x8xbf16> to vector<8x8xbf16>
    %47 = vector.shape_cast %44 : vector<8x8xbf16> to vector<1x1x8x8xbf16>
    tpu.vector_store %arg12[%c0_35, %c2_36, %c0_37, %c0_38], %47 {strides = array<i32>} : memref<1x4x8x8xbf16, #tpu.memory_space<vmem>>, vector<1x1x8x8xbf16>,
    %48 = vector.extract_strided_slice %35 {offsets = [0, 24], sizes = [8, 8], strides = [1, 1]} : vector<8x32xbf16> to vector<8x8xbf16>
    %c0_39 = arith.constant 0 : index
    %c3_40 = arith.constant 3 : index
    %c0_41 = arith.constant 0 : index
    %c0_42 = arith.constant 0 : index
    %49 = vector.load %arg12[%c0_39, %c3_40, %c0_41, %c0_42] : memref<1x4x8x8xbf16, #tpu.memory_space<vmem>>, vector<1x1x8x8xbf16>
    %50 = vector.shape_cast %49 : vector<1x1x8x8xbf16> to vector<8x8xbf16>
    %51 = vector.shape_cast %48 : vector<8x8xbf16> to vector<1x1x8x8xbf16>
    tpu.vector_store %arg12[%c0_39, %c3_40, %c0_41, %c0_42], %51 {strides = array<i32>} : memref<1x4x8x8xbf16, #tpu.memory_space<vmem>>, vector<1x1x8x8xbf16>,
    %c0_43 = arith.constant 0 : index
    %c0_44 = arith.constant 0 : index
    %c0_45 = arith.constant 0 : index
    %52 = vector.load %arg4[%c0_43, %c0_44, %c0_45] : memref<1x8x32xf32, #tpu.memory_space<vmem>>, vector<1x8x32xf32>
    %53 = vector.shape_cast %52 : vector<1x8x32xf32> to vector<8x32xf32>
    %54 = arith.truncf %53 : vector<8x32xf32> to vector<8x32xbf16>
    %c0_46 = arith.constant 0 : index
    %c0_47 = arith.constant 0 : index
    %55 = vector.load %arg9[%c0_46, %c0_47] : memref<32x32xbf16, #tpu.memory_space<vmem>>, vector<32x32xbf16>
    %cst_48 = arith.constant dense<0.000000e+00> : vector<8x32xf32>
    %56 = tpu.matmul %54, %55, %cst_48 {dimension_numbers = #tpu.dot_dimension_numbers<[1], [0], [0], [1], [0, 0, 1, 1], [], []>} : vector<8x32xbf16>, vector<32x32xbf16>, vector<8x32xf32> -> vector<8x32xf32>
    %c0_49 = arith.constant 0 : index
    %c0_50 = arith.constant 0 : index
    %57 = vector.load %arg10[%c0_49, %c0_50] : memref<1x32xbf16, #tpu.memory_space<vmem>>, vector<1x32xbf16>
    %58 = arith.extf %57 : vector<1x32xbf16> to vector<1x32xf32>
    %59 = vector.broadcast %58 : vector<1x32xf32> to vector<8x32xf32>
    %60 = arith.addf %56, %59 : vector<8x32xf32>
    %61 = arith.truncf %60 : vector<8x32xf32> to vector<8x32xbf16>
    %62 = vector.extract_strided_slice %61 {offsets = [0, 0], sizes = [8, 8], strides = [1, 1]} : vector<8x32xbf16> to vector<8x8xbf16>
    %c0_51 = arith.constant 0 : index
    %c0_52 = arith.constant 0 : index
    %c0_53 = arith.constant 0 : index
    %c0_54 = arith.constant 0 : index
    %63 = vector.load %arg13[%c0_51, %c0_52, %c0_53, %c0_54] : memref<1x4x8x8xbf16, #tpu.memory_space<vmem>>, vector<1x1x8x8xbf16>
    %64 = vector.shape_cast %63 : vector<1x1x8x8xbf16> to vector<8x8xbf16>
    %65 = vector.shape_cast %62 : vector<8x8xbf16> to vector<1x1x8x8xbf16>
    tpu.vector_store %arg13[%c0_51, %c0_52, %c0_53, %c0_54], %65 {strides = array<i32>} : memref<1x4x8x8xbf16, #tpu.memory_space<vmem>>, vector<1x1x8x8xbf16>,
    %66 = vector.extract_strided_slice %61 {offsets = [0, 8], sizes = [8, 8], strides = [1, 1]} : vector<8x32xbf16> to vector<8x8xbf16>
    %c0_55 = arith.constant 0 : index
    %c1_56 = arith.constant 1 : index
    %c0_57 = arith.constant 0 : index
    %c0_58 = arith.constant 0 : index
    %67 = vector.load %arg13[%c0_55, %c1_56, %c0_57, %c0_58] : memref<1x4x8x8xbf16, #tpu.memory_space<vmem>>, vector<1x1x8x8xbf16>
    %68 = vector.shape_cast %67 : vector<1x1x8x8xbf16> to vector<8x8xbf16>
    %69 = vector.shape_cast %66 : vector<8x8xbf16> to vector<1x1x8x8xbf16>
    tpu.vector_store %arg13[%c0_55, %c1_56, %c0_57, %c0_58], %69 {strides = array<i32>} : memref<1x4x8x8xbf16, #tpu.memory_space<vmem>>, vector<1x1x8x8xbf16>,
    %70 = vector.extract_strided_slice %61 {offsets = [0, 16], sizes = [8, 8], strides = [1, 1]} : vector<8x32xbf16> to vector<8x8xbf16>
    %c0_59 = arith.constant 0 : index
    %c2_60 = arith.constant 2 : index
    %c0_61 = arith.constant 0 : index
    %c0_62 = arith.constant 0 : index
    %71 = vector.load %arg13[%c0_59, %c2_60, %c0_61, %c0_62] : memref<1x4x8x8xbf16, #tpu.memory_space<vmem>>, vector<1x1x8x8xbf16>
    %72 = vector.shape_cast %71 : vector<1x1x8x8xbf16> to vector<8x8xbf16>
    %73 = vector.shape_cast %70 : vector<8x8xbf16> to vector<1x1x8x8xbf16>
    tpu.vector_store %arg13[%c0_59, %c2_60, %c0_61, %c0_62], %73 {strides = array<i32>} : memref<1x4x8x8xbf16, #tpu.memory_space<vmem>>, vector<1x1x8x8xbf16>,
    %74 = vector.extract_strided_slice %61 {offsets = [0, 24], sizes = [8, 8], strides = [1, 1]} : vector<8x32xbf16> to vector<8x8xbf16>
    %c0_63 = arith.constant 0 : index
    %c3_64 = arith.constant 3 : index
    %c0_65 = arith.constant 0 : index
    %c0_66 = arith.constant 0 : index
    %75 = vector.load %arg13[%c0_63, %c3_64, %c0_65, %c0_66] : memref<1x4x8x8xbf16, #tpu.memory_space<vmem>>, vector<1x1x8x8xbf16>
    %76 = vector.shape_cast %75 : vector<1x1x8x8xbf16> to vector<8x8xbf16>
    %77 = vector.shape_cast %74 : vector<8x8xbf16> to vector<1x1x8x8xbf16>
    tpu.vector_store %arg13[%c0_63, %c3_64, %c0_65, %c0_66], %77 {strides = array<i32>} : memref<1x4x8x8xbf16, #tpu.memory_space<vmem>>, vector<1x1x8x8xbf16>,
    return
  }
  func.func @transform_0(%arg0: i32, %arg1: i32) -> (i32, i32, i32) {
    %c0_i32 = arith.constant 0 : i32
    %c0_i32_0 = arith.constant 0 : i32
    return %arg0, %arg1, %c0_i32 : i32, i32, i32
  }
  func.func @transform_1(%arg0: i32, %arg1: i32) -> (i32, i32, i32) {
    %c0_i32 = arith.constant 0 : i32
    %c0_i32_0 = arith.constant 0 : i32
    return %arg0, %arg1, %c0_i32 : i32, i32, i32
  }
  func.func @transform_2(%arg0: i32, %arg1: i32) -> (i32, i32, i32) {
    %c0_i32 = arith.constant 0 : i32
    %c0_i32_0 = arith.constant 0 : i32
    return %arg0, %arg1, %c0_i32 : i32, i32, i32
  }
  func.func @transform_3(%arg0: i32, %arg1: i32) -> (i32, i32) {
    %c0_i32 = arith.constant 0 : i32
    %c0_i32_0 = arith.constant 0 : i32
    %c0_i32_1 = arith.constant 0 : i32
    return %c0_i32, %c0_i32_0 : i32, i32
  }
  func.func @transform_4(%arg0: i32, %arg1: i32) -> (i32, i32) {
    %c0_i32 = arith.constant 0 : i32
    %c0_i32_0 = arith.constant 0 : i32
    %c0_i32_1 = arith.constant 0 : i32
    return %c0_i32, %c0_i32_0 : i32, i32
  }
  func.func @transform_5(%arg0: i32, %arg1: i32) -> (i32, i32) {
    %c0_i32 = arith.constant 0 : i32
    %c0_i32_0 = arith.constant 0 : i32
    %c0_i32_1 = arith.constant 0 : i32
    return %c0_i32, %c0_i32_0 : i32, i32
  }
  func.func @transform_6(%arg0: i32, %arg1: i32) -> (i32, i32) {
    %c0_i32 = arith.constant 0 : i32
    %c0_i32_0 = arith.constant 0 : i32
    %c0_i32_1 = arith.constant 0 : i32
    return %c0_i32, %c0_i32_0 : i32, i32
  }
  func.func @transform_7(%arg0: i32, %arg1: i32) -> (i32, i32) {
    %c0_i32 = arith.constant 0 : i32
    %c0_i32_0 = arith.constant 0 : i32
    %c0_i32_1 = arith.constant 0 : i32
    return %c0_i32, %c0_i32_0 : i32, i32
  }
  func.func @transform_8(%arg0: i32, %arg1: i32) -> (i32, i32) {
    %c0_i32 = arith.constant 0 : i32
    %c0_i32_0 = arith.constant 0 : i32
    %c0_i32_1 = arith.constant 0 : i32
    return %c0_i32, %c0_i32_0 : i32, i32
  }
  func.func @transform_9(%arg0: i32, %arg1: i32) -> (i32, i32, i32, i32) {
    %c0_i32 = arith.constant 0 : i32
    %c0_i32_0 = arith.constant 0 : i32
    %c0_i32_1 = arith.constant 0 : i32
    return %arg0, %c0_i32, %arg1, %c0_i32_0 : i32, i32, i32, i32
  }
  func.func @transform_10(%arg0: i32, %arg1: i32) -> (i32, i32, i32, i32) {
    %c0_i32 = arith.constant 0 : i32
    %c0_i32_0 = arith.constant 0 : i32
    %c0_i32_1 = arith.constant 0 : i32
    return %arg0, %c0_i32, %arg1, %c0_i32_0 : i32, i32, i32, i32
  }
  func.func @transform_11(%arg0: i32, %arg1: i32) -> (i32, i32, i32, i32) {
    %c0_i32 = arith.constant 0 : i32
    %c0_i32_0 = arith.constant 0 : i32
    %c0_i32_1 = arith.constant 0 : i32
    return %arg0, %c0_i32, %arg1, %c0_i32_0 : i32, i32, i32, i32
  }
}

</mosaic_0001>

<bundles_post_ra>
// kernel: tpu_custom_call.1
= control target key start
LH: loop header
LB: loop body
LE: loop exit
PB: predicated region body
PF: predicated region fallthrough
CT: control target
= control target key end

     0   :  { %s1960_s0 = inlined_call_operand.hbm [shape: f32[2,8,32], index: 0, kind: input, shape index: {}]   ;;  %s1961_s1 = inlined_call_operand.hbm [shape: f32[2,8,32], index: 1, kind: input, shape index: {}]   ;;  %s1962_s2 = inlined_call_operand.hbm [shape: f32[2,8,32], index: 2, kind: input, shape index: {}]   ;;  %s1963_s3 = inlined_call_operand.hbm [shape: bf16[32,32], index: 3, kind: input, shape index: {}]   ;;  %s1964_s4 = inlined_call_operand.vmem [shape: bf16[1,32], index: 4, kind: input, shape index: {}]   ;;  %s1965_s5 = inlined_call_operand.hbm [shape: bf16[32,32], index: 5, kind: input, shape index: {}]   ;;  %s1966_s6 = inlined_call_operand.vmem [shape: bf16[1,32], index: 6, kind: input, shape index: {}]   ;;  %s1967_s7 = inlined_call_operand.hbm [shape: bf16[32,32], index: 7, kind: input, shape index: {}]   ;;  %s1968_s8 = inlined_call_operand.vmem [shape: bf16[1,32], index: 8, kind: input, shape index: {}]   ;;  %s1969_s9 = inlined_call_operand.hbm [shape: bf16[2,4,8,8], index: 9, kind: output, shape index: {0}]   ;;  %s1970_s10 = inlined_call_operand.hbm [shape: bf16[2,4,8,8], index: 10, kind: output, shape index: {1}]   ;;  %s1971_s11 = inlined_call_operand.hbm [shape: bf16[2,4,8,8], index: 11, kind: output, shape index: {2}]  }
   0x1   :  { %1989 = sst [smem:[#allocation31_spill]] %s1961_s1 }
   0x2   :  { %1990 = sst [smem:[#allocation32_spill]] %s1963_s3 }
   0x3   :  { %1991 = sst [smem:[#allocation33_spill]] %s1965_s5 }
   0x4   :  { %1992 = sst [smem:[#allocation34_spill]] %s1967_s7 }
   0x5   :  { %1993 = sst [smem:[#allocation35_spill]] %s1969_s9 }
   0x6   :  { %1994 = sst [smem:[#allocation36_spill]] %s1970_s10 }
   0x7   :  { %1995 = sst [smem:[#allocation37_spill]] %s1971_s11 }
   0x8   :  { %17 = vsyncpa [#allocation3], 0 }
   0x9   :  { %19 = vsyncpa [#allocation3 + $0x1], 0 }
   0xa   :  { %20 = vsyncpa [#allocation6], 0 }
   0xb   :  { %22 = vsyncpa [#allocation6 + $0x1], 0 }
   0xc   :  { %23 = vsyncpa [#allocation9], 0 }
   0xd   :  { %24 = vsyncpa [#allocation12], 0 }
   0xe   :  { %25 = vsyncpa [#allocation4], 0 }
   0xf   :  { %27 = vsyncpa [#allocation4 + $0x1], 0 }
  0x10   :  { %28 = vsyncpa [#allocation15], 0 }
  0x11   :  { %30 = vsyncpa [#allocation15 + $0x1], 0  ;;  %s1635_s17 = smov 0   ;;  %s1637_s18 = smov 0  }
  0x12   :  { %s1639_s19 = smov 0   ;;  %s1641_s20 = smov 0  }
  0x13   :  { %s1643_s21 = smov 0   ;;  %s1645_s22 = smov 0  }
  0x14 LB: > { %1996 = sst [smem:[#allocation23_spill]] %s1543_s17  ;;  %s1666_s23 = sadd.s32 4294967295, %s1563_s22   ;;  %s1563_s22 = sphi %s1645_s22, %s36_s22   ;;  %s1559_s21 = sphi %s1643_s21, %s2029_s21   ;;  %s1555_s20 = sphi %s1641_s20, %s2028_s20   ;;  %s1551_s19 = sphi %s1639_s19, %s2032_s19   ;;  %s1547_s18 = sphi %s1637_s18, %s2031_s18   ;;  %s1543_s17 = sphi %s1635_s17, %s2030_s17  }
  0x15   : > { %1997 = sst [smem:[#allocation24_spill]] %s1555_s20  ;;  %p1032_p0 = scmp.ge.s32.totalorder %s1563_s22, 1 }
  0x16   : > { %1998 = sst [smem:[#allocation25_spill]] %s1559_s21  ;;  %p71_p1 = scmp.eq.s32.totalorder %s1666_s23, 0 }
  0x17   : > { %1999 = sst [smem:[#allocation26_spill]] %s1563_s22  ;;  %p347_p2 = scmp.lt.s32.totalorder %s1563_s22, 3 }
  0x18   : > { %s2000_s3 = sld [smem:[#allocation32_spill]]  ;;  %s1565_s28 = smov [#allocation8]  }
  0x19   : > { %p1674_p3 = pnand %p1032_p0, %p347_p2  ;;  %s360_s29 = sshll.u32 %s1565_s28, 4  ;;  %s361_s29 = int_to_ptr.vmem [resolvable:$true] %s360_s29 }
  0x1a   : > { %p1036_p6 = scmp.ge.s32.totalorder %s1563_s22, 2  ;;  %s1972_s12 = smov 64  }
  0x1b   : > { %p1133_p4 = pneg %p1674_p3  ;;  %s1974_s13 = smov 4  }
  0x1c   : > { %s1977_s14 = sadd.s32 4294967294, %s1563_s22   ;;  %s48_s15 = sadd.s32 1, %s1559_s21 }
  0x1d   : > { %p1682_p5 = pnand %p1133_p4, %p71_p1  ;;  %s57_s16 = sadd.s32 1, %s1551_s19 }
  0x1e   : > { %s358_s26 = sshll.u32 %s2000_s3, 4  ;;  %p50_p7 = scmp.ge.s32.totalorder %s48_s15, 2  ;;  %s359_s26 = int_to_ptr.hbm [resolvable:$true] %s358_s26 }
  0x1f   : > { %1136 = dma.hbm_to_vmem [thread:$0]  (!%p1682_p5), %s359_s26, 256, %s361_s29, [#allocation9], %s1972_s12, %s1972_s12, %s1974_s13  }
  0x20   : > { %p64_p8 = scmp.ne.s32.totalorder %s1551_s19, %s1547_s18  ;;  %p65_p9 = scmp.eq.s32.totalorder %s1563_s22, 0 }
  0x21   : > { %p70_p10 = scmp.ne.s32.totalorder %s1547_s18, %s1543_s17  ;;  %s2034_s15 = smov (%p50_p7, %s48_s15), 0 }
  0x22   : > { %2003 = sst [smem:[#allocation27_spill]] %s2034_s15  ;;  %p1702_p11 = por %p65_p9, %p64_p8 }
  0x23   : > { %p1708_p12 = por %p71_p1, %p70_p10  ;;  %s52_s26 = ssub.s32 %s1559_s21, %s2034_s15 }
  0x24   : > { %p278_p13 = scmp.eq.s32.totalorder %s1666_s23, 1  ;;  %p55_p0 = scmp.eq.s32.totalorder %s52_s26, 0 }
  0x25   : > { %p284_p2 = scmp.eq.s32.totalorder %s1977_s14, 1  ;;  %p1166_p7 = scmp.lt.s32.totalorder %s1563_s22, 2 }
  0x26   : > { %p1717_p4 = por %p278_p13, %p64_p8  ;;  %s1981_s13 = sand.u32 1, %s1551_s19  }
  0x27   : > { %s1723_s29 = scalar_select %p55_p0, %s1551_s19, %s57_s16  }
  0x28   : > { %s2006_s28 = scalar_select %p1717_p4, 1, 0 }
  0x29   : > { %2008 = sst [smem:[#allocation29_spill]] %s1723_s29  ;;  %p1725_p9 = por %p284_p2, %p70_p10 }
  0x2a   : > { %2007 = sst [smem:[#allocation28_spill]] %s2006_s28  ;;  %s1732_s3 = sshll.u32 %s1981_s13, 3 }
  0x2b   : > { %s2009_s12 = scalar_select %p1725_p9, 1, 0 }
  0x2c   : > { %s1735_s15 = sshll.u32 %s1559_s21, 3  ;;  %p1739_p8 = pnand %p1166_p7, %p1702_p11 }
  0x2d   : > { %2010 = sst [smem:[#allocation30_spill]] %s2009_s12  ;;  %s431_s16 = sand.u32 1, %s1563_s22  }
  0x2e   : > { %s2012_s1 = sld [smem:[#allocation31_spill]]  ;;  %s435_s11 = scalar_lea.vmem [#allocation5], %s1732_s3 }
  0x2f   : > { %s444_s13 = sshll.u32 %s435_s11, 4  ;;  %s1749_s24 = scalar_lea.sflag [#allocation6], %s431_s16  ;;  %s445_s13 = int_to_ptr.vmem [resolvable:$true] %s444_s13 }
  0x30   : > { %s2013_s5 = sld [smem:[#allocation33_spill]]  ;;  %s1568_s14 = smov [#allocation10]  }
  0x31   : > { %s2014_s7 = sld [smem:[#allocation34_spill]]  ;;  %s2015_s16 = smov 4  }
  0x32   : > { %s2016_s9 = smov 64   ;;  %s415_s11 = scalar_lea.vmem [#allocation2], %s1732_s3 }
  0x33   : > { %s424_s29 = sshll.u32 %s415_s11, 4  ;;  %s455_s10 = scalar_lea.vmem [#allocation7], %s1732_s3  ;;  %s425_s29 = int_to_ptr.vmem [resolvable:$true] %s424_s29 }
  0x34   : > { %s440_s12 = scalar_lea.hbm %s2012_s1, %s1735_s15  ;;  %s464_s20 = sshll.u32 %s455_s10, 4  ;;  %s465_s20 = int_to_ptr.vmem [resolvable:$true] %s464_s20 }
  0x35   : > { %s442_s17 = sshll.u32 %s440_s12, 4  ;;  %s377_s12 = sshll.u32 %s1568_s14, 4  ;;  %s443_s17 = int_to_ptr.hbm [resolvable:$true] %s442_s17  ;;  %s378_s12 = int_to_ptr.vmem [resolvable:$true] %s377_s12 }
  0x36   : > { %1149 = dma.hbm_to_vmem [thread:$0]  (!%p1739_p8), %s443_s17, 128, %s445_s13, %s1749_s24  }
  0x37   : > { %s375_s22 = sshll.u32 %s2013_s5, 4  ;;  %s392_s1 = sshll.u32 %s2014_s7, 4  ;;  %s376_s22 = int_to_ptr.hbm [resolvable:$true] %s375_s22  ;;  %s393_s1 = int_to_ptr.hbm [resolvable:$true] %s392_s1 }
  0x38   : > { %1139 = dma.hbm_to_vmem [thread:$0]  (!%p1682_p5), %s376_s22, 256, %s378_s12, [#allocation9], %s2016_s9, %s2016_s9, %s2015_s16  }
  0x39   : > { %s1569_s17 = smov [#allocation11]   ;;  %s420_s14 = scalar_lea.hbm %s1960_s0, %s1735_s15 }
  0x3a   : > { %s394_s21 = sshll.u32 %s1569_s17, 4  ;;  %s422_s5 = sshll.u32 %s420_s14, 4  ;;  %s395_s21 = int_to_ptr.vmem [resolvable:$true] %s394_s21  ;;  %s423_s5 = int_to_ptr.hbm [resolvable:$true] %s422_s5 }
  0x3b   : > { %1142 = dma.hbm_to_vmem [thread:$0]  (!%p1682_p5), %s393_s1, 256, %s395_s21, [#allocation12], %s2016_s9, %s2016_s9, %s2015_s16  }
  0x3c   : > { %s2017_s22 = sand.u32 1, %s1551_s19   ;;  %s460_s7 = scalar_lea.hbm %s1962_s2, %s1735_s15 }
  0x3d   : > { %s412_s12 = scalar_lea.sflag [#allocation3], %s2017_s22  ;;  %s462_s1 = sshll.u32 %s460_s7, 4  ;;  %s463_s1 = int_to_ptr.hbm [resolvable:$true] %s462_s1 }
  0x3e   : > { %1146 = dma.hbm_to_vmem [thread:$0]  (!%p1739_p8), %s423_s5, 128, %s425_s29, %s412_s12  }
  0x3f   : > { %1152 = dma.hbm_to_vmem [thread:$0]  (!%p1739_p8), %s463_s1, 128, %s465_s20, %s1749_s24  }
  0x40   : > { %473 = sbr.rel (%p1674_p3) target bundleno = 373 (0x175), region = 56  ;;  %s1790_s9 = sand.u32 (!%p1674_p3), 1, %s1547_s18  }
  0x41   : > { %s1044_s5 = sshll.u32 (!%p1674_p3), %s1790_s9, 3  ;;  %s476_s16 = scalar_lea.sflag (!%p1674_p3), [#allocation3], %s1790_s9 }
  0x42   : > { %s479_s21 = scalar_lea.vmem (!%p1674_p3), [#allocation2], %s1044_s5 }
  0x45   : > { %1518 = dma.done.wait (%p1708_p12), %s476_s16, 128  }
  0x46   : > { %1520 = vsyncadd (%p1708_p12), %s476_s16, 4294967168  ;;  %s485_s3 = sand.u32 1, %s1666_s23   ;;  %s489_s10 = scalar_lea.vmem [#allocation5], %s1044_s5 }
  0x47   : > { %s486_s7 = scalar_lea.sflag [#allocation6], %s485_s3 }
  0x48   : > { %1522 = dma.done.wait (%p1708_p12), %s486_s7, 256  }
  0x49   : > { %1524 = vsyncadd (%p1708_p12), %s486_s7, 4294967040  ;;  %s499_s20 = scalar_lea.vmem [#allocation7], %s1044_s5 }
  0x4a   : > { %1526 = dma.done.wait (%p71_p1), [#allocation9], 512  }
  0x4b   : > { %1528 = vsyncadd (%p71_p1), [#allocation9], 4294966784 }
  0x4c   : > { %1530 = dma.done.wait (%p71_p1), [#allocation12], 256  }
  0x4d   : > { %1532 = vsyncadd (%p71_p1), [#allocation12], 4294967040  ;;  %v1101_v0 = vld [vmem:[#allocation8 + $0x8] sm:$0xff]  ;;  %v1103_v1 = vld [vmem:[#allocation10 + $0x8] sm:$0xff]  ;;  %vm596_vm0 = vcmask 261120   ;;  %s1050_s28 = sshll.u32 %s1790_s9, 4 }
  0x4e   : > { %v1105_v2 = vld [vmem:[#allocation11 + $0x8] sm:$0xff]  ;;  %v1100_v3 = vld [vmem:[#allocation8] sm:$0xff]  ;;  %606 = vmatpush.bf16.msra.mxu0 %v1101_v0  ;;  %662 = vmatpush.bf16.msra.mxu1 %v1103_v1  ;;  %v1102_v4 = vld [vmem:[#allocation10] sm:$0xff]  ;;  %vm614_vm1 = vcmask 60416   ;;  %s1823_s14 = scalar_lea.vmem [#allocation13], %s1050_s28  ;;  %s1570_s11 = smov 104  }
  0x4f   : > { %v575_v5 = vld [vmem:[%s479_s21] sm:$0xff]  ;;  %v632_v6 = vld [vmem:[%s489_s10] sm:$0xff]  ;;  %717 = vmatpush.bf16.msra.mxu2 %v1105_v2  ;;  %s1571_s29 = smov 120   ;;  %s1827_s22 = scalar_lea.vmem [#allocation14], %s1050_s28 }
  0x50   : > { %v1104_v7 = vld [vmem:[#allocation11] sm:$0xff]  ;;  %v687_v8 = vld [vmem:[%s499_s20] sm:$0xff]  ;;  %v576_v9 = vpack.c.bf16 %v575_v5, %v575_v5  ;;  %v633_v10 = vpack.c.bf16 %v632_v6, %v632_v6  ;;  %s1572_s12 = smov 112   ;;  %s2018_s30 = sld [smem:[#allocation24_spill]] }
  0x51   : > { %v688_v11 = vpack.c.bf16 %v687_v8, %v687_v8  ;;  %v581_v12 = vld [vmem:[%s1964_s4] sm:$0x1]  ;;  %s1831_s17 = scalar_lea.vmem [#allocation16], %s1050_s28  ;;  %s766_s5 = sshll.u32 %s1823_s14, 4  ;;  %s1858_s5 = int_to_ptr.vmem [resolvable:$true] %s766_s5 }
  0x52   : > { %607 = vmatpush.bf16.msra.mxu0 %v1100_v3  ;;  %663 = vmatpush.bf16.msra.mxu1 %v1102_v4  ;;  %v638_v13 = vld [vmem:[%s1966_s6] sm:$0x1]  ;;  %v582_v14 = vunpack.c.l.bf16 %v581_v12  ;;  %s2019_s7 = sld [smem:[#allocation36_spill]]  ;;  %s784_s20 = sshll.u32 %s1827_s22, 4  ;;  %s785_s20 = int_to_ptr.vmem [resolvable:$true] %s784_s20 }
  0x53   : > { %718 = vmatpush.bf16.msra.mxu2 %v1104_v7  ;;  %v639_v15 = vunpack.c.l.bf16 %v638_v13  ;;  %v693_v18 = vld [vmem:[%s1968_s8] sm:$0x1]  ;;  %s2020_s25 = sld [smem:[#allocation35_spill]]  ;;  %s1876_s16 = scalar_lea.sflag [#allocation15], %s485_s3 }
  0x54   : > { %v583_v16 = vperm.slane %v582_v14, 0  ;;  %v694_v21 = vunpack.c.l.bf16 %v693_v18 }
  0x55   : > { %1061 = vmatmul.msk.bf16.vlgmr.msra.gmra.mxu0 %vm596_vm0, %v576_v9  ;;  %1073 = vmatmul.msk.bf16.vlgmr.msra.gmra.mxu1 %vm596_vm0, %v633_v10  ;;  %v640_v17 = vperm.slane %v639_v15, 0 }
  0x56   : > { %1085 = vmatmul.msk.bf16.vlgmr.msra.gmra.mxu2 %vm596_vm0, %v688_v11  ;;  %v695_v26 = vperm.slane %v694_v21, 0  ;;  %s1842_s1 = sshll.u32 %s2018_s30, 4 }
  0x58   : > { %s783_s10 = scalar_lea.hbm %s2019_s7, %s1842_s1 }
  0x59   : > { %s765_s26 = scalar_lea.hbm %s2020_s25, %s1842_s1  ;;  %s1860_s13 = sshll.u32 %s783_s10, 4  ;;  %s787_s13 = int_to_ptr.hbm [resolvable:$true] %s1860_s13 }
  0x5a   : > { %s1862_s28 = sshll.u32 %s765_s26, 4  ;;  %s1423_s21 = sshra.s32 %s787_s13, 4  ;;  %s769_s28 = int_to_ptr.hbm [resolvable:$true] %s1862_s28  ;;  %s1424_s21 = int_to_ptr.hbm [resolvable:$true] %s1423_s21 }
  0x5b   : > { %s1425_s10 = scalar_lea.hbm %s1424_s21, 16  ;;  %p1430_p10 = scmp.lt.s32.totalorder %s1424_s21, %s2019_s7 }
  0x5c   : > { %p1426_p1 = scmp.ne.s32.totalorder %s1424_s21, %s1425_s10 }
  0x5e   : > { %p1427_p3 = pnand %p1426_p1, %p1717_p4 }
  0x60   : > { %p1428_p5 = pneg %p1427_p3 }
  0xd2   : > { %v609_v19 = vpop.f32.mrf.mxu0  ;;  %v665_v20 = vpop.f32.mrf.mxu1 }
  0xd3   : > { %v610_v22 = vadd.f32 %v609_v19, %v583_v16  ;;  %v666_v23 = vadd.f32 %v665_v20, %v640_v17 }
  0xd5   : > { %v613_v24 = vpack.c.bf16 %v610_v22, %v610_v22  ;;  %v669_v25 = vpack.c.bf16 %v666_v23, %v666_v23 }
  0xd7   : > { %615 = vst.msk [vmem:[%s1823_s14] sm:$0xf] %vm614_vm1, %v613_v24  ;;  %682 = vrot.lane.b32.xlu1 %v669_v25, %s1570_s11  ;;  %672 = vrot.lane.b32.xlu0 %v669_v25, %s1571_s29 }
  0xd8   : > { %670 = vst.msk [vmem:[%s1827_s22] sm:$0xf] %vm614_vm1, %v669_v25  ;;  %622 = vrot.lane.b32.xlu2 %v613_v24, %s1572_s12 }
  0xd9   : > { %v720_v27 = vpop.f32.mrf.mxu2 }
  0xda   : > { %v611_v28 = vpop.f32.mrf.mxu0  ;;  %v667_v29 = vpop.f32.mrf.mxu1  ;;  %v721_v30 = vadd.f32 %v720_v27, %v695_v26 }
  0xdc   : > { %v724_v31 = vpack.c.bf16 %v721_v30, %v721_v30 }
  0xde   : > { %725 = vst.msk [vmem:[%s1831_s17] sm:$0xf] %vm614_vm1, %v724_v31 }
  0xdf   : > { %677 = vrot.lane.b32.xlu0 %v669_v25, %s1572_s12  ;;  %617 = vrot.lane.b32.xlu1 %v613_v24, %s1571_s29 }
  0xe0   : > { %627 = vrot.lane.b32.xlu2 %v613_v24, %s1570_s11 }
  0xe1   : > { %v722_v32 = vpop.f32.mrf.mxu2 }
  0xe7   : > { %727 = vrot.lane.b32.xlu0 %v724_v31, %s1571_s29  ;;  %732 = vrot.lane.b32.xlu1 %v724_v31, %s1572_s12  ;;  %s2022_s12 = sld [smem:[#allocation37_spill]] }
  0xe8   : > { %737 = vrot.lane.b32.xlu2 %v724_v31, %s1570_s11 }
  0xed   : > { %s801_s30 = scalar_lea.hbm %s2022_s12, %s1842_s1 }
 0x132   : > { %v623_v33 = vpop.permute.xlu2 %622 }
 0x133   : > { %1063 = vst.msk [vmem:[%s1823_s14 + $0x8] sm:$0xf] %vm614_vm1, %v623_v33 }
 0x13a   : > { %v628_v34 = vpop.permute.xlu2 %627 }
 0x13b   : > { %1064 = vst.msk [vmem:[%s1823_s14 + $0xc] sm:$0xf] %vm614_vm1, %v628_v34 }
 0x142   : > { %v738_v35 = vpop.permute.xlu2 %737 }
 0x143   : > { %1088 = vst.msk [vmem:[%s1831_s17 + $0xc] sm:$0xf] %vm614_vm1, %v738_v35 }
 0x149   : > { %v683_v36 = vpop.permute.xlu1 %682  ;;  %v673_v37 = vpop.permute.xlu0 %672 }
 0x14a   : > { %1076 = vst.msk [vmem:[%s1827_s22 + $0xc] sm:$0xf] %vm614_vm1, %v683_v36 }
 0x14b   : > { %1074 = vst.msk [vmem:[%s1827_s22 + $0x4] sm:$0xf] %vm614_vm1, %v673_v37 }
 0x151   : > { %v678_v38 = vpop.permute.xlu0 %677  ;;  %v618_v39 = vpop.permute.xlu1 %617 }
 0x152   : > { %1075 = vst.msk [vmem:[%s1827_s22 + $0x8] sm:$0xf] %vm614_vm1, %v678_v38  ;;  %s1429_s22 = scalar_lea.hbm %s2019_s7, 32 }
 0x153   : > { %1062 = vst.msk [vmem:[%s1823_s14 + $0x4] sm:$0xf] %vm614_vm1, %v618_v39  ;;  %p1431_p11 = scmp.lt.s32.totalorder %s1429_s22, %s1425_s10 }
 0x155   : > { %p1432_p12 = por %p1431_p11, %p1430_p10 }
 0x157   : > { %p1433_p13 = pnand %p1432_p12, %p1428_p5 }
 0x159   : > { %1436 = shalt.err (!%p1433_p13)
}
 0x15a   : > { %s1573_s23 = smov 64   ;;  %s1574_s3 = smov 4  }
 0x15b   : > { %1128 = dma.vmem_to_hbm [thread:$0]  (%p1717_p4), %s785_s20, 256, %s787_s13, %s1876_s16, %s1573_s23, %s1573_s23, %s1574_s3  }
 0x15c   : > { %s743_s11 = scalar_lea.sflag [#allocation4], %s1790_s9  ;;  %s1451_s29 = sshra.s32 %s769_s28, 4  ;;  %s1452_s29 = int_to_ptr.hbm [resolvable:$true] %s1451_s29 }
 0x15d   : > { %s1453_s21 = scalar_lea.hbm %s1452_s29, 16  ;;  %s1457_s15 = scalar_lea.hbm %s2020_s25, 32 }
 0x15e   : > { %p1454_p0 = scmp.ne.s32.totalorder %s1452_s29, %s1453_s21  ;;  %p1458_p8 = scmp.lt.s32.totalorder %s1452_s29, %s2020_s25 }
 0x15f   : > { %p1459_p1 = scmp.lt.s32.totalorder %s1457_s15, %s1453_s21 }
 0x160   : > { %p1455_p2 = pnand %p1454_p0, %p1717_p4 }
 0x161   : > { %p1460_p3 = por %p1459_p1, %p1458_p8 }
 0x162   : > { %p1456_p7 = pneg %p1455_p2 }
 0x164   : > { %p1461_p5 = pnand %p1460_p3, %p1456_p7 }
 0x166   : > { %1464 = shalt.err (!%p1461_p5)
}
 0x167   : > { %1127 = dma.vmem_to_hbm [thread:$0]  (%p1717_p4), %s1858_s5, 256, %s769_s28, %s743_s11, %s1573_s23, %s1573_s23, %s1574_s3   ;;  %v728_v40 = vpop.permute.xlu0 %727  ;;  %v733_v41 = vpop.permute.xlu1 %732 }
 0x168   : > { %s802_s9 = sshll.u32 %s1831_s17, 4  ;;  %s804_s14 = sshll.u32 %s801_s30, 4  ;;  %1086 = vst.msk [vmem:[%s1831_s17 + $0x4] sm:$0xf] %vm614_vm1, %v728_v40  ;;  %s803_s9 = int_to_ptr.vmem [resolvable:$true] %s802_s9  ;;  %s805_s14 = int_to_ptr.hbm [resolvable:$true] %s804_s14 }
 0x169   : > { %1087 = vst.msk [vmem:[%s1831_s17 + $0x8] sm:$0xf] %vm614_vm1, %v733_v41  ;;  %s1479_s29 = sshra.s32 %s805_s14, 4  ;;  %s1485_s1 = scalar_lea.hbm %s2022_s12, 32  ;;  %s1480_s29 = int_to_ptr.hbm [resolvable:$true] %s1479_s29 }
 0x16a   : > { %s1481_s21 = scalar_lea.hbm %s1480_s29, 16  ;;  %p1486_p13 = scmp.lt.s32.totalorder %s1480_s29, %s2022_s12 }
 0x16b   : > { %p1482_p10 = scmp.ne.s32.totalorder %s1480_s29, %s1481_s21  ;;  %p1487_p0 = scmp.lt.s32.totalorder %s1485_s1, %s1481_s21 }
 0x16d   : > { %p1483_p11 = pnand %p1482_p10, %p1717_p4  ;;  %p1488_p2 = por %p1487_p0, %p1486_p13 }
 0x16f   : > { %p1484_p12 = pneg %p1483_p11 }
 0x171   : > { %p1489_p7 = pnand %p1488_p2, %p1484_p12 }
 0x173   : > { %1492 = shalt.err (!%p1489_p7)
}
 0x174   : > { %1129 = dma.vmem_to_hbm [thread:$0]  (%p1717_p4), %s803_s9, 256, %s805_s14, %s1876_s16, %s1573_s23, %s1573_s23, %s1574_s3  }
 0x175 PF: > { %s2023_s17 = sld [smem:[#allocation23_spill]]  ;;  %p1154_p8 = pnand %p1036_p6, %p1725_p9 }
 0x176   : > { %s2025_s27 = sld [smem:[#allocation26_spill]] }
 0x177   : > { %p1155_p1 = pneg %p1154_p8 }
 0x17b   : > { %s819_s15 = sand.u32 1, %s2023_s17  }
 0x17c   : > { %s820_s22 = scalar_lea.sflag [#allocation4], %s819_s15 }
 0x17d   : > { %1534 = dma.done.wait (%p1155_p1), %s820_s22, 256  }
 0x17e   : > { %1536 = vsyncadd (%p1155_p1), %s820_s22, 4294967040  ;;  %s2026_s26 = sadd.s32 4294967294, %s2025_s27  }
 0x17f   : > { %s829_s24 = sand.u32 1, %s2026_s26  }
 0x180   : > { %s830_s20 = scalar_lea.sflag [#allocation15], %s829_s24 }
 0x181   : > { %1538 = dma.done.wait (%p1155_p1), %s830_s20, 512  }
 0x182   : > { %1540 = vsyncadd (%p1155_p1), %s830_s20, 4294966784  ;;  %s36_s22 = sadd.s32 1, %s2025_s27   ;;  %s2027_s16 = sld [smem:[#allocation29_spill]] }
 0x183   : > { %p33_p4 = scmp.ge.s32.totalorder %s36_s22, 4   ;;  %s2028_s20 = sld [smem:[#allocation25_spill]] }
 0x184   : > { %s2029_s21 = sld [smem:[#allocation27_spill]]  ;;  %s2030_s17 = smov %s1547_s18 }
 0x185   : > { %s2031_s18 = smov %s1551_s19  ;;  %35 = sbr.rel (!%p33_p4) target bundleno = 20 (0x14), region = 178 }
 0x188   : > { %s2032_s19 = smov %s2027_s16 }
 0x18a   :  { %846 = vsyncpa [#allocation3], 1 }
 0x18b   :  { %848 = vsyncpa [#allocation3 + $0x1], 1 }
 0x18c   :  { %849 = vsyncpa [#allocation6], 1 }
 0x18d   :  { %851 = vsyncpa [#allocation6 + $0x1], 1 }
 0x18e   :  { %852 = vsyncpa [#allocation9], 1 }
 0x18f   :  { %853 = vsyncpa [#allocation12], 1 }
 0x190   :  { %854 = vsyncpa [#allocation4], 1 }
 0x191   :  { %856 = vsyncpa [#allocation4 + $0x1], 1 }
 0x192   :  { %857 = vsyncpa [#allocation15], 1 }
 0x193   :  { %859 = vsyncpa [#allocation15 + $0x1], 1 }

</bundles_post_ra>
